<compile_context>
chip_gen: v7x
topology: tpu7x:2x2x1
jax: 0.10.0
libtpu: 0.0.40
codegen_flags: <defaults>
</compile_context>

<pallas_src>
import functools

import jax
import jax.numpy as jnp
from jax.experimental import pallas as pl
from jax.experimental.pallas import tpu as pltpu


def _tvl1_kernel(d_ref, g_ref, l1_ref, tv_ref, acc_l1, acc_tv):
    """One (batch, W-tile) grid step."""
    w = pl.program_id(1)
    nw = pl.num_programs(1)
    C = d_ref.shape[1]
    H = d_ref.shape[2]

    @pl.when(w == 0)
    def _init():
        acc_l1[...] = jnp.zeros_like(acc_l1)
        acc_tv[...] = jnp.zeros_like(acc_tv)

    d = d_ref[...].astype(jnp.float32)          # (1, C, H, WT)  f32 math/accumulation
    g = g_ref[...].astype(jnp.float32)

    # L1 partial: reduce leading (1, C) dims -> (H, WT).  Pure VALU adds.
    acc_l1[...] += jnp.sum(jnp.abs(d - g), axis=(0, 1))

    # TV along dim 1 (channel diff) -- C is whole in-block, so no halo.
    if C > 1:
        dif1 = d[:, 1:, :, :] - d[:, :-1, :, :]            # (1, C-1, H, WT)
        acc_tv[...] += jnp.sum(jnp.abs(dif1), axis=(0, 1))

    # TV along dim 2 (height diff) -- H is whole in-block, so no halo.
    if H > 1:
        dif2 = d[:, :, 1:, :] - d[:, :, :-1, :]            # (1, C, H-1, WT)
        s2 = jnp.sum(jnp.abs(dif2), axis=(0, 1))           # (H-1, WT)
        acc_tv[0:H - 1, :] += s2

    # Epilogue: one cross-lane/sublane reduce per batch, lane-dense output write.
    @pl.when(w == nw - 1)
    def _fin():
        l1_ref[...] = jnp.zeros_like(l1_ref) + jnp.sum(acc_l1[...])
        tv_ref[...] = jnp.zeros_like(tv_ref) + jnp.sum(acc_tv[...])


def _plan_w(W, C, H, itemsize, budget_bytes=4 << 20):
    """Pick (padded_W, W_TILE).  ~4 MiB/input block keeps v7x's 64 MiB VMEM safe
    (and is already near the HBM roofline on v5e/v6e)."""
    if W % 128 != 0:
        if W < 128:
            return W, W                      # full-extent lane block (valid BlockSpec)
        W_pad = ((W + 127) // 128) * 128     # zero-pad (exact for this loss)
    else:
        W_pad = W
    tile = 128
    t = 128
    while t <= W_pad:
        if W_pad % t == 0 and C * H * t * itemsize <= budget_bytes:
            tile = t
        t += 128
    return W_pad, tile


def tvl1_loss(decoded, gt, beta=1.0):
    assert decoded.ndim == 4 and decoded.shape == gt.shape
    N, C, H, W = decoded.shape
    numel = N * C * H * W                    # true element count for the L1 mean

    itemsize = jnp.dtype(decoded.dtype).itemsize
    W_pad, WT = _plan_w(W, C, H, itemsize)
    if W_pad != W:
        pad = ((0, 0), (0, 0), (0, 0), (0, W_pad - W))
        decoded = jnp.pad(decoded, pad)      # zero pad: contributes exactly 0
        gt = jnp.pad(gt, pad)
    KW = W_pad // WT

    in_spec_d = pl.BlockSpec((1, C, H, WT), lambda n, w: (n, 0, 0, w))
    in_spec_g = pl.BlockSpec((1, C, H, WT), lambda n, w: (n, 0, 0, w))
    out_spec = pl.BlockSpec((1, 8, 128), lambda n, w: (n, 0, 0))

    # VMEM: 2 inputs x 2 pipeline buffers x block + 2 accumulators + outputs + slack.
    block_bytes = C * H * WT * itemsize
    vmem_needed = 4 * block_bytes + 2 * H * WT * 4 + 2 * 8 * 128 * 4 + (2 << 20)
    vmem_limit = int(min(max(vmem_needed, 16 << 20), 48 << 20))

    l1_slab, tv_slab = pl.pallas_call(
        _tvl1_kernel,
        out_shape=(
            jax.ShapeDtypeStruct((N, 8, 128), jnp.float32),
            jax.ShapeDtypeStruct((N, 8, 128), jnp.float32),
        ),
        grid_spec=pltpu.PrefetchScalarGridSpec(
            num_scalar_prefetch=0,
            grid=(N, KW),                           # reduction (W-tile) axis last
            in_specs=[in_spec_d, in_spec_g],
            out_specs=(out_spec, out_spec),
            scratch_shapes=[
                pltpu.VMEM((H, WT), jnp.float32),   # L1 accumulator
                pltpu.VMEM((H, WT), jnp.float32),   # TV accumulator
            ],
        ),
        compiler_params=pltpu.CompilerParams(
            dimension_semantics=("parallel", "arbitrary"),
            vmem_limit_bytes=vmem_limit,
        ),
    )(decoded, gt)

    l1_mean = jnp.sum(l1_slab[:, 0, 0]) / numel     # scalar: mean over ALL elements
    tv = tv_slab[:, 0, 0]                           # (N,): per-batch total variation
    return l1_mean + tv * beta                      # (N,), same broadcast as PyTorch


tvl1_loss_jit = jax.jit(tvl1_loss, static_argnames=("beta",))


def _tvl1_ref(decoded, gt, beta=1.0):
    """Pure-JAX reference (mirrors the PyTorch module)."""
    l1 = jnp.mean(jnp.abs(decoded - gt))
    d1 = decoded[:, 1:, :, :] - decoded[:, :-1, :, :]
    d2 = decoded[:, :, 1:, :] - decoded[:, :, :-1, :]
    tv = jnp.sum(jnp.abs(d1), axis=(1, 2, 3)) + jnp.sum(jnp.abs(d2), axis=(1, 2, 3))
    return l1 + tv * beta


if __name__ == "__main__":
    key = jax.random.PRNGKey(0)
    k1, k2 = jax.random.split(key)
    N, C, H, W = 2, 4, 16, 16
    decoded = jax.random.normal(k1, (N, C, H, W), dtype=jnp.float32)
    gt = jax.random.normal(k2, (N, C, H, W), dtype=jnp.float32)

    out = tvl1_loss_jit(decoded, gt, beta=1.0)
    out = jax.block_until_ready(out)

    ref = _tvl1_ref(decoded, gt, beta=1.0)
    assert out.shape == (N,), (out.shape, (N,))
    assert jnp.allclose(out, ref, rtol=1e-4, atol=1e-4), (out, ref)
    print("KERNEL_OK")
</pallas_src>

<mosaic_0001>
module attributes {stable_mosaic.version = 11 : i64} {
  func.func @_tvl1_kernel(%arg0: i32, %arg1: i32, %arg2: memref<1x4x16x16xf32, #tpu.memory_space<vmem>>, %arg3: memref<1x4x16x16xf32, #tpu.memory_space<vmem>>, %arg4: memref<1x8x128xf32, #tpu.memory_space<vmem>>, %arg5: memref<1x8x128xf32, #tpu.memory_space<vmem>>, %arg6: memref<16x16xf32, #tpu.memory_space<vmem>>, %arg7: memref<16x16xf32, #tpu.memory_space<vmem>>) attributes {dimension_semantics = [#tpu.dimension_semantics<parallel>, #tpu.dimension_semantics<arbitrary>], iteration_bounds = array<i64: 2, 1>, scalar_prefetch = 0 : i64, scratch_operands = 2 : i64, tpu.core_type = #tpu.core_type<tc>, window_params = [{transform_indices = @transform_0, window_bounds = array<i64: 1, 4, 16, 16>}, {transform_indices = @transform_1, window_bounds = array<i64: 1, 4, 16, 16>}, {transform_indices = @transform_2, window_bounds = array<i64: 1, 8, 128>}, {transform_indices = @transform_3, window_bounds = array<i64: 1, 8, 128>}]} {
    %c0_i32 = arith.constant 0 : i32
    %0 = arith.cmpi eq, %arg1, %c0_i32 : i32
    %1 = arith.extui %0 : i1 to i32
    %c0_i32_0 = arith.constant 0 : i32
    %2 = arith.cmpi ne, %1, %c0_i32_0 : i32
    scf.if %2 {
      %cst_24 = arith.constant 0.000000e+00 : f32
      %30 = vector.broadcast %cst_24 : f32 to vector<16x16xf32>
      %c0_25 = arith.constant 0 : index
      %c0_26 = arith.constant 0 : index
      %31 = vector.load %arg6[%c0_25, %c0_26] : memref<16x16xf32, #tpu.memory_space<vmem>>, vector<16x16xf32>
      tpu.vector_store %arg6[%c0_25, %c0_26], %30 {strides = array<i32>} : memref<16x16xf32, #tpu.memory_space<vmem>>, vector<16x16xf32>,
      %cst_27 = arith.constant 0.000000e+00 : f32
      %32 = vector.broadcast %cst_27 : f32 to vector<16x16xf32>
      %c0_28 = arith.constant 0 : index
      %c0_29 = arith.constant 0 : index
      %33 = vector.load %arg7[%c0_28, %c0_29] : memref<16x16xf32, #tpu.memory_space<vmem>>, vector<16x16xf32>
      tpu.vector_store %arg7[%c0_28, %c0_29], %32 {strides = array<i32>} : memref<16x16xf32, #tpu.memory_space<vmem>>, vector<16x16xf32>,
    } else {
    }
    %c0 = arith.constant 0 : index
    %c0_1 = arith.constant 0 : index
    %c0_2 = arith.constant 0 : index
    %c0_3 = arith.constant 0 : index
    %3 = vector.load %arg2[%c0, %c0_1, %c0_2, %c0_3] : memref<1x4x16x16xf32, #tpu.memory_space<vmem>>, vector<1x4x16x16xf32>
    %c0_4 = arith.constant 0 : index
    %c0_5 = arith.constant 0 : index
    %c0_6 = arith.constant 0 : index
    %c0_7 = arith.constant 0 : index
    %4 = vector.load %arg3[%c0_4, %c0_5, %c0_6, %c0_7] : memref<1x4x16x16xf32, #tpu.memory_space<vmem>>, vector<1x4x16x16xf32>
    %c0_8 = arith.constant 0 : index
    %c0_9 = arith.constant 0 : index
    %5 = vector.load %arg6[%c0_8, %c0_9] : memref<16x16xf32, #tpu.memory_space<vmem>>, vector<16x16xf32>
    %6 = arith.subf %3, %4 : vector<1x4x16x16xf32>
    %7 = math.absf %6 : vector<1x4x16x16xf32>
    %cst = arith.constant dense<0.000000e+00> : vector<16x16xf32>
    %8 = vector.multi_reduction <add>, %7, %cst [0, 1] : vector<1x4x16x16xf32> to vector<16x16xf32>
    %9 = arith.addf %5, %8 : vector<16x16xf32>
    %c0_10 = arith.constant 0 : index
    %c0_11 = arith.constant 0 : index
    %10 = vector.load %arg6[%c0_10, %c0_11] : memref<16x16xf32, #tpu.memory_space<vmem>>, vector<16x16xf32>
    tpu.vector_store %arg6[%c0_10, %c0_11], %9 {strides = array<i32>} : memref<16x16xf32, #tpu.memory_space<vmem>>, vector<16x16xf32>,
    %11 = vector.extract_strided_slice %3 {offsets = [0, 1, 0, 0], sizes = [1, 3, 16, 16], strides = [1, 1, 1, 1]} : vector<1x4x16x16xf32> to vector<1x3x16x16xf32>
    %12 = vector.extract_strided_slice %3 {offsets = [0, 0, 0, 0], sizes = [1, 3, 16, 16], strides = [1, 1, 1, 1]} : vector<1x4x16x16xf32> to vector<1x3x16x16xf32>
    %13 = arith.subf %11, %12 : vector<1x3x16x16xf32>
    %c0_12 = arith.constant 0 : index
    %c0_13 = arith.constant 0 : index
    %14 = vector.load %arg7[%c0_12, %c0_13] : memref<16x16xf32, #tpu.memory_space<vmem>>, vector<16x16xf32>
    %15 = math.absf %13 : vector<1x3x16x16xf32>
    %cst_14 = arith.constant dense<0.000000e+00> : vector<16x16xf32>
    %16 = vector.multi_reduction <add>, %15, %cst_14 [0, 1] : vector<1x3x16x16xf32> to vector<16x16xf32>
    %17 = arith.addf %14, %16 : vector<16x16xf32>
    %c0_15 = arith.constant 0 : index
    %c0_16 = arith.constant 0 : index
    %18 = vector.load %arg7[%c0_15, %c0_16] : memref<16x16xf32, #tpu.memory_space<vmem>>, vector<16x16xf32>
    tpu.vector_store %arg7[%c0_15, %c0_16], %17 {strides = array<i32>} : memref<16x16xf32, #tpu.memory_space<vmem>>, vector<16x16xf32>,
    %19 = vector.extract_strided_slice %3 {offsets = [0, 0, 1, 0], sizes = [1, 4, 15, 16], strides = [1, 1, 1, 1]} : vector<1x4x16x16xf32> to vector<1x4x15x16xf32>
    %20 = vector.extract_strided_slice %3 {offsets = [0, 0, 0, 0], sizes = [1, 4, 15, 16], strides = [1, 1, 1, 1]} : vector<1x4x16x16xf32> to vector<1x4x15x16xf32>
    %21 = arith.subf %19, %20 : vector<1x4x15x16xf32>
    %22 = math.absf %21 : vector<1x4x15x16xf32>
    %cst_17 = arith.constant dense<0.000000e+00> : vector<15x16xf32>
    %23 = vector.multi_reduction <add>, %22, %cst_17 [0, 1] : vector<1x4x15x16xf32> to vector<15x16xf32>
    %c0_18 = arith.constant 0 : index
    %c0_19 = arith.constant 0 : index
    %24 = vector.load %arg7[%c0_18, %c0_19] : memref<16x16xf32, #tpu.memory_space<vmem>>, vector<15x16xf32>
    %25 = arith.addf %24, %23 : vector<15x16xf32>
    %c0_20 = arith.constant 0 : index
    %c0_21 = arith.constant 0 : index
    %26 = vector.load %arg7[%c0_20, %c0_21] : memref<16x16xf32, #tpu.memory_space<vmem>>, vector<15x16xf32>
    tpu.vector_store %arg7[%c0_20, %c0_21], %25 {strides = array<i32>} : memref<16x16xf32, #tpu.memory_space<vmem>>, vector<15x16xf32>,
    %c0_i32_22 = arith.constant 0 : i32
    %27 = arith.cmpi eq, %arg1, %c0_i32_22 : i32
    %28 = arith.extui %27 : i1 to i32
    %c0_i32_23 = arith.constant 0 : i32
    %29 = arith.cmpi ne, %28, %c0_i32_23 : i32
    scf.if %29 {
      %cst_24 = arith.constant 0.000000e+00 : f32
      %30 = vector.broadcast %cst_24 : f32 to vector<1x8x128xf32>
      %c0_25 = arith.constant 0 : index
      %c0_26 = arith.constant 0 : index
      %31 = vector.load %arg6[%c0_25, %c0_26] : memref<16x16xf32, #tpu.memory_space<vmem>>, vector<16x16xf32>
      %32 = vector.shape_cast %31 : vector<16x16xf32> to vector<1x16x16xf32>
      %cst_27 = arith.constant dense<0.000000e+00> : vector<1xf32>
      %33 = vector.multi_reduction <add>, %32, %cst_27 [1, 2] : vector<1x16x16xf32> to vector<1xf32>
      %34 = vector.shape_cast %33 : vector<1xf32> to vector<1x1x1xf32>
      %35 = vector.extract %34[0, 0, 0] : f32 from vector<1x1x1xf32>
      %36 = vector.broadcast %35 : f32 to vector<1x8x128xf32>
      %37 = arith.addf %30, %36 : vector<1x8x128xf32>
      %c0_28 = arith.constant 0 : index
      %c0_29 = arith.constant 0 : index
      %c0_30 = arith.constant 0 : index
      %38 = vector.load %arg4[%c0_28, %c0_29, %c0_30] : memref<1x8x128xf32, #tpu.memory_space<vmem>>, vector<1x8x128xf32>
      tpu.vector_store %arg4[%c0_28, %c0_29, %c0_30], %37 {strides = array<i32>} : memref<1x8x128xf32, #tpu.memory_space<vmem>>, vector<1x8x128xf32>,
      %cst_31 = arith.constant 0.000000e+00 : f32
      %39 = vector.broadcast %cst_31 : f32 to vector<1x8x128xf32>
      %c0_32 = arith.constant 0 : index
      %c0_33 = arith.constant 0 : index
      %40 = vector.load %arg7[%c0_32, %c0_33] : memref<16x16xf32, #tpu.memory_space<vmem>>, vector<16x16xf32>
      %41 = vector.shape_cast %40 : vector<16x16xf32> to vector<1x16x16xf32>
      %cst_34 = arith.constant dense<0.000000e+00> : vector<1xf32>
      %42 = vector.multi_reduction <add>, %41, %cst_34 [1, 2] : vector<1x16x16xf32> to vector<1xf32>
      %43 = vector.shape_cast %42 : vector<1xf32> to vector<1x1x1xf32>
      %44 = vector.extract %43[0, 0, 0] : f32 from vector<1x1x1xf32>
      %45 = vector.broadcast %44 : f32 to vector<1x8x128xf32>
      %46 = arith.addf %39, %45 : vector<1x8x128xf32>
      %c0_35 = arith.constant 0 : index
      %c0_36 = arith.constant 0 : index
      %c0_37 = arith.constant 0 : index
      %47 = vector.load %arg5[%c0_35, %c0_36, %c0_37] : memref<1x8x128xf32, #tpu.memory_space<vmem>>, vector<1x8x128xf32>
      tpu.vector_store %arg5[%c0_35, %c0_36, %c0_37], %46 {strides = array<i32>} : memref<1x8x128xf32, #tpu.memory_space<vmem>>, vector<1x8x128xf32>,
    } else {
    }
    return
  }
  func.func @transform_0(%arg0: i32, %arg1: i32) -> (i32, i32, i32, i32) {
    %c0_i32 = arith.constant 0 : i32
    %c0_i32_0 = arith.constant 0 : i32
    %c0_i32_1 = arith.constant 0 : i32
    return %arg0, %c0_i32, %c0_i32_0, %arg1 : i32, i32, i32, i32
  }
  func.func @transform_1(%arg0: i32, %arg1: i32) -> (i32, i32, i32, i32) {
    %c0_i32 = arith.constant 0 : i32
    %c0_i32_0 = arith.constant 0 : i32
    %c0_i32_1 = arith.constant 0 : i32
    return %arg0, %c0_i32, %c0_i32_0, %arg1 : i32, i32, i32, i32
  }
  func.func @transform_2(%arg0: i32, %arg1: i32) -> (i32, i32, i32) {
    %c0_i32 = arith.constant 0 : i32
    %c0_i32_0 = arith.constant 0 : i32
    %c0_i32_1 = arith.constant 0 : i32
    return %arg0, %c0_i32, %c0_i32_0 : i32, i32, i32
  }
  func.func @transform_3(%arg0: i32, %arg1: i32) -> (i32, i32, i32) {
    %c0_i32 = arith.constant 0 : i32
    %c0_i32_0 = arith.constant 0 : i32
    %c0_i32_1 = arith.constant 0 : i32
    return %arg0, %c0_i32, %c0_i32_0 : i32, i32, i32
  }
}

</mosaic_0001>

<bundles_post_ra>
// kernel: tvl1_loss.1
= control target key start
LH: loop header
LB: loop body
LE: loop exit
PB: predicated region body
PF: predicated region fallthrough
CT: control target
= control target key end

     0   :  { %9 = vsyncpa [#allocation5], 0  ;;  %s1114_s0 = inlined_call_operand.hbm [shape: f32[2,4,16,16], index: 0, kind: input, shape index: {}]   ;;  %s1115_s1 = inlined_call_operand.hbm [shape: f32[2,4,16,16], index: 1, kind: input, shape index: {}]   ;;  %s1116_s2 = inlined_call_operand.vmem [shape: f32[2,8,128], index: 2, kind: output, shape index: {0}]   ;;  %s1117_s3 = inlined_call_operand.vmem [shape: f32[2,8,128], index: 3, kind: output, shape index: {1}]  }
   0x1   :  { %11 = vsyncpa [#allocation5 + $0x1], 0 }
   0x2   :  { %12 = vsyncpa [#allocation7], 0 }
   0x3   :  { %14 = vsyncpa [#allocation7 + $0x1], 0  ;;  %s818_s12 = smov 0   ;;  %s820_s13 = smov 0  }
   0x4   :  { %s822_s14 = smov 0   ;;  %s824_s15 = smov 0  }
   0x5   :  { %s826_s16 = smov 0   ;;  %s828_s17 = smov 0  }
   0x6 LB: > { %s591_s18 = sadd.s32 4294967295, %s791_s17   ;;  %s32_s19 = sadd.s32 1, %s787_s16  ;;  %s791_s17 = sphi %s828_s17, %s20_s17   ;;  %s787_s16 = sphi %s826_s16, %s1128_s16   ;;  %s783_s15 = sphi %s824_s15, %s1127_s15   ;;  %s779_s14 = sphi %s822_s14, %s1126_s14   ;;  %s775_s13 = sphi %s820_s13, %s1125_s13   ;;  %s771_s12 = sphi %s818_s12, %s1124_s12  }
   0x7   : > { %p34_p0 = scmp.ge.s32.totalorder %s32_s19, 2  ;;  %s41_s20 = sadd.s32 1, %s779_s14 }
   0x8   : > { %p48_p1 = scmp.ne.s32.totalorder %s779_s14, %s775_s13  ;;  %p49_p2 = scmp.eq.s32.totalorder %s791_s17, 0 }
   0x9   : > { %s1130_s19 = smov (%p34_p0, %s32_s19), 0  ;;  %p54_p4 = scmp.ne.s32.totalorder %s775_s13, %s771_s12 }
   0xa   : > { %p854_p3 = por %p49_p2, %p48_p1  ;;  %s36_s22 = ssub.s32 %s787_s16, %s1130_s19 }
   0xb   : > { %p55_p5 = scmp.eq.s32.totalorder %s591_s18, 0  ;;  %p39_p6 = scmp.eq.s32.totalorder %s36_s22, 0 }
   0xc   : > { %p625_p8 = scmp.lt.s32.totalorder %s791_s17, 2  ;;  %s870_s25 = sand.u32 1, %s779_s14  }
   0xd   : > { %p861_p7 = por %p55_p5, %p54_p4  ;;  %s608_s26 = sshll.u32 %s787_s16, 10 }
   0xe   : > { %s867_s24 = scalar_select %p39_p6, %s779_s14, %s41_s20  }
   0xf   : > { %s1120_s23 = scalar_select %p861_p7, 1, 0 }
  0x10   : > { %s595_s27 = sshll.u32 %s870_s25, 6  ;;  %s879_s30 = scalar_lea.hbm %s1114_s0, %s608_s26 }
  0x11   : > { %s162_s4 = scalar_lea.vmem [#allocation4], %s595_s27  ;;  %p885_p9 = pnand %p625_p8, %p854_p3 }
  0x12   : > { %s170_s5 = sshll.u32 %s162_s4, 4  ;;  %s159_s7 = scalar_lea.sflag [#allocation5], %s870_s25  ;;  %s889_s5 = int_to_ptr.vmem [resolvable:$true] %s170_s5 }
  0x13   : > { %s677_s8 = scalar_lea.hbm %s879_s30, 1024  ;;  %p679_p11 = pneg %p885_p9 }
  0x14   : > { %p678_p10 = scmp.ne.s32.totalorder %s879_s30, %s677_s8  ;;  %s682_s11 = scalar_lea.hbm %s1114_s0, 2048 }
  0x15   : > { %p683_p0 = scmp.lt.u32.totalorder %s879_s30, %s1114_s0  ;;  %p684_p1 = scmp.lt.u32.totalorder %s682_s11, %s677_s8 }
  0x16   : > { %p680_p12 = pnand %p679_p11, %p678_p10  ;;  %p686_p3 = scmp.lt.u32.totalorder %s677_s8, %s879_s30 }
  0x17   : > { %p685_p2 = por %p684_p1, %p683_p0 }
  0x18   : > { %p681_p13 = pneg %p680_p12 }
  0x19   : > { %p687_p4 = por %p686_p3, %p685_p2 }
  0x1b   : > { %p688_p5 = pnand %p687_p4, %p681_p13 }
  0x1d   : > { %691 = shalt.err (!%p688_p5)
}
  0x1e   : > { %s692_s20 = scalar_lea.vmem %s889_s5, 1024  ;;  %s793_s21 = smov [#allocation4]  }
  0x1f   : > { %p693_p6 = scmp.ne.s32.totalorder %s889_s5, %s692_s20  ;;  %s697_s22 = sshll.u32 %s793_s21, 4  ;;  %s698_s22 = int_to_ptr.vmem [resolvable:$false] %s697_s22 }
  0x20   : > { %s699_s28 = scalar_lea.vmem %s698_s22, 2048  ;;  %p700_p12 = scmp.lt.s32.totalorder %s889_s5, %s698_s22 }
  0x21   : > { %p695_p8 = pnand %p693_p6, %p679_p11  ;;  %p701_p0 = scmp.lt.s32.totalorder %s699_s28, %s692_s20 }
  0x23   : > { %p696_p10 = pneg %p695_p8  ;;  %p702_p1 = por %p701_p0, %p700_p12 }
  0x25   : > { %p703_p2 = pnand %p702_p1, %p696_p10 }
  0x27   : > { %706 = shalt.err (!%p703_p2)
}
  0x28   : > { %s794_s29 = smov 128   ;;  %s795_s4 = smov 8  }
  0x29   : > { %621 = dma.hbm_to_vmem [thread:$0]  (!%p885_p9), %s879_s30, 1024, %s889_s5, %s159_s7, %s794_s29, %s794_s29, %s795_s4  }
  0x2a   : > { %p601_p13 = scmp.ge.s32.totalorder %s791_s17, 1  ;;  %p200_p3 = scmp.lt.s32.totalorder %s791_s17, 3 }
  0x2b   : > { %s933_s11 = scalar_lea.hbm %s1115_s1, %s608_s26  ;;  %s184_s12 = scalar_lea.vmem [#allocation6], %s595_s27 }
  0x2c   : > { %p924_p4 = pnand %p601_p13, %p200_p3  ;;  %s192_s18 = sshll.u32 %s184_s12, 4  ;;  %s937_s18 = int_to_ptr.vmem [resolvable:$true] %s192_s18 }
  0x2d   : > { %s181_s30 = scalar_lea.sflag [#allocation7], %s870_s25  ;;  %s707_s5 = scalar_lea.hbm %s933_s11, 1024 }
  0x2e   : > { %p708_p5 = scmp.ne.s32.totalorder %s933_s11, %s707_s5  ;;  %s712_s26 = scalar_lea.hbm %s1115_s1, 2048 }
  0x2f   : > { %p713_p10 = scmp.lt.u32.totalorder %s933_s11, %s1115_s1  ;;  %p714_p12 = scmp.lt.u32.totalorder %s712_s26, %s707_s5 }
  0x30   : > { %p710_p6 = pnand %p708_p5, %p679_p11  ;;  %p716_p1 = scmp.lt.u32.totalorder %s707_s5, %s933_s11 }
  0x31   : > { %p715_p0 = por %p714_p12, %p713_p10 }
  0x32   : > { %p711_p8 = pneg %p710_p6 }
  0x33   : > { %p717_p2 = por %p716_p1, %p715_p0 }
  0x35   : > { %p718_p13 = pnand %p717_p2, %p711_p8 }
  0x37   : > { %721 = shalt.err (!%p718_p13)
}
  0x38   : > { %s722_s27 = scalar_lea.vmem %s937_s18, 1024  ;;  %s796_s28 = smov [#allocation6]  }
  0x39   : > { %p723_p3 = scmp.ne.s32.totalorder %s937_s18, %s722_s27  ;;  %s727_s9 = sshll.u32 %s796_s28, 4  ;;  %s728_s9 = int_to_ptr.vmem [resolvable:$false] %s727_s9 }
  0x3a   : > { %s729_s10 = scalar_lea.vmem %s728_s9, 2048  ;;  %p730_p7 = scmp.lt.s32.totalorder %s937_s18, %s728_s9 }
  0x3b   : > { %p725_p5 = pnand %p723_p3, %p679_p11  ;;  %p731_p10 = scmp.lt.s32.totalorder %s729_s10, %s722_s27 }
  0x3d   : > { %p726_p6 = pneg %p725_p5  ;;  %p732_p12 = por %p731_p10, %p730_p7 }
  0x3f   : > { %p733_p0 = pnand %p732_p12, %p726_p6 }
  0x41   : > { %736 = shalt.err (!%p733_p0)
}
  0x42   : > { %624 = dma.hbm_to_vmem [thread:$0]  (!%p885_p9), %s933_s11, 1024, %s937_s18, %s181_s30, %s794_s29, %s794_s29, %s795_s4  }
  0x43   : > { %204 = sbr.rel (%p924_p4) target bundleno = 330 (0x14a), region = 28  ;;  %s206_s12 = sand.u32 (!%p924_p4), 1, %s775_s13  }
  0x44   : > { %s602_s5 = sshll.u32 (!%p924_p4), %s206_s12, 6  ;;  %s207_s7 = scalar_lea.sflag (!%p924_p4), [#allocation5], %s206_s12 }
  0x45   : > { %s210_s20 = scalar_lea.vmem (!%p924_p4), [#allocation4], %s602_s5  ;;  %p1123_p7 = scmp.ne.s32.totalorder (!%p924_p4), %s1120_s23, 0 }
  0x4a   : > { %762 = dma.done.wait (%p1123_p7), %s207_s7, 1024  }
  0x4b   : > { %764 = vsyncadd (%p1123_p7), %s207_s7, 4294966272  ;;  %s216_s6 = scalar_lea.sflag [#allocation7], %s206_s12  ;;  %s975_s25 = scalar_lea.vmem [#allocation6], %s602_s5 }
  0x4c   : > { %766 = dma.done.wait (%p1123_p7), %s216_s6, 1024  }
  0x4d   : > { %768 = vsyncadd (%p1123_p7), %s216_s6, 4294966272  ;;  %vm262_vm0 = vcmask 130048   ;;  %v797_v0 = vmov 0.0   ;;  %v985_v1 = vld [vmem:[%s210_s20] sm:$0xff]  ;;  %v987_v2 = vld [vmem:[%s210_s20 + $0x8] sm:$0xff]  ;;  %vm356_vm1 = vcmask 1040384  }
  0x4e   : > { %263 = vst.msk [vmem:[#allocation2] sm:$0xff] %vm262_vm0, %v797_v0  ;;  %264 = vst.msk [vmem:[#allocation2 + $0x8] sm:$0xff] %vm262_vm0, %v797_v0  ;;  %v989_v3 = vld [vmem:[%s210_s20 + $0x10] sm:$0xff]  ;;  %v991_v4 = vld [vmem:[%s210_s20 + $0x18] sm:$0xff]  ;;  %v357_v8 = vrot.slane %v985_v1, 7  ;;  %v358_v9 = vrot.slane %v987_v2, 7 }
  0x4f   : > { %265 = vst.msk [vmem:[#allocation3] sm:$0xff] %vm262_vm0, %v797_v0  ;;  %266 = vst.msk [vmem:[#allocation3 + $0x8] sm:$0xff] %vm262_vm0, %v797_v0  ;;  %v993_v5 = vld [vmem:[%s210_s20 + $0x20] sm:$0xff]  ;;  %v995_v6 = vld [vmem:[%s210_s20 + $0x28] sm:$0xff]  ;;  %v320_v7 = vsub.f32 %v989_v3, %v985_v1  ;;  %v360_v10 = vrot.slane %v989_v3, 7  ;;  %v321_v14 = vsub.f32 %v991_v4, %v987_v2  ;;  %v361_v17 = vrot.slane %v991_v4, 7 }
  0x50   : > { %v1002_v11 = vld [vmem:[%s210_s20 + $0x30] sm:$0xff]  ;;  %v1004_v12 = vld [vmem:[%s210_s20 + $0x38] sm:$0xff]  ;;  %v275_v13 = vld [vmem:[%s975_s25] sm:$0xff]  ;;  %v322_v15 = vsub.f32 %v993_v5, %v989_v3  ;;  %v323_v16 = vsub.f32 %v995_v6, %v991_v4  ;;  %v359_v44 = vsel %vm356_vm1, %v357_v8, %v358_v9  ;;  %vm393_vm2 = vcmask 130049   ;;  %p250_p9 = scmp.lt.s32.totalorder %s783_s15, 1 }
  0x51   : > { %v276_v18 = vld [vmem:[%s975_s25 + $0x8] sm:$0xff]  ;;  %v277_v19 = vld [vmem:[%s975_s25 + $0x10] sm:$0xff]  ;;  %v278_v20 = vld [vmem:[%s975_s25 + $0x18] sm:$0xff]  ;;  %v285_v21 = vsub.f32 %v985_v1, %v275_v13  ;;  %v324_v22 = vsub.f32 %v1002_v11, %v993_v5  ;;  %v325_v23 = vsub.f32 %v1004_v12, %v995_v6  ;;  %v328_v24 = vand.u32 2147483647, %v320_v7 }
  0x52   : > { %v279_v25 = vld [vmem:[%s975_s25 + $0x20] sm:$0xff]  ;;  %v280_v26 = vld [vmem:[%s975_s25 + $0x28] sm:$0xff]  ;;  %v281_v27 = vld [vmem:[%s975_s25 + $0x30] sm:$0xff]  ;;  %v286_v28 = vsub.f32 %v987_v2, %v276_v18  ;;  %v287_v29 = vsub.f32 %v989_v3, %v277_v19  ;;  %v288_v30 = vsub.f32 %v991_v4, %v278_v20  ;;  %v329_v31 = vand.u32 2147483647, %v321_v14  ;;  %s1132_s15 = smov (!%p250_p9, %s783_s15), 1 }
  0x53   : > { %v282_v32 = vld [vmem:[%s975_s25 + $0x38] sm:$0xff]  ;;  %v289_v33 = vsub.f32 %v993_v5, %v279_v25  ;;  %v290_v34 = vsub.f32 %v995_v6, %v280_v26  ;;  %v291_v35 = vsub.f32 %v1002_v11, %v281_v27  ;;  %v293_v36 = vand.u32 2147483647, %v285_v21  ;;  %s604_s23 = sshll.u32 %s1132_s15, 3 }
  0x54   : > { %v292_v37 = vsub.f32 %v1004_v12, %v282_v32  ;;  %v294_v38 = vand.u32 2147483647, %v286_v28  ;;  %v295_v39 = vand.u32 2147483647, %v287_v29  ;;  %v296_v40 = vand.u32 2147483647, %v288_v30  ;;  %s253_s8 = scalar_lea.vmem %s1116_s2, %s604_s23  ;;  %s257_s26 = scalar_lea.vmem %s1117_s3, %s604_s23 }
  0x55   : > { %v297_v41 = vand.u32 2147483647, %v289_v33  ;;  %v298_v42 = vand.u32 2147483647, %v290_v34  ;;  %v299_v43 = vand.u32 2147483647, %v291_v35  ;;  %v378_v34 = vsub.f32 %v987_v2, %v359_v44 }
  0x56   : > { %v300_v45 = vand.u32 2147483647, %v292_v37  ;;  %v302_v46 = vsel %vm262_vm0, %v293_v36, 0.0  ;;  %v303_v47 = vsel %vm262_vm0, %v295_v39, 0.0  ;;  %v309_v48 = vsel %vm262_vm0, %v294_v38, 0.0  ;;  %v283_v61 = vld [vmem:[#allocation2] sm:$0xff] }
  0x57   : > { %v304_v49 = vadd.f32 %v303_v47, %v302_v46  ;;  %v305_v50 = vsel %vm262_vm0, %v297_v41, 0.0  ;;  %v307_v51 = vsel %vm262_vm0, %v299_v43, 0.0  ;;  %v310_v52 = vsel %vm262_vm0, %v296_v40, 0.0  ;;  %v284_v9 = vld [vmem:[#allocation2 + $0x8] sm:$0xff] }
  0x58   : > { %v311_v53 = vadd.f32 %v310_v52, %v309_v48  ;;  %v312_v54 = vsel %vm262_vm0, %v298_v42, 0.0  ;;  %v314_v55 = vsel %vm262_vm0, %v300_v45, 0.0  ;;  %v330_v56 = vand.u32 2147483647, %v322_v15 }
  0x59   : > { %v306_v57 = vadd.f32 %v305_v50, %v304_v49  ;;  %v331_v58 = vand.u32 2147483647, %v323_v16  ;;  %v332_v59 = vand.u32 2147483647, %v324_v22  ;;  %v333_v60 = vand.u32 2147483647, %v325_v23 }
  0x5a   : > { %v313_v62 = vadd.f32 %v312_v54, %v311_v53  ;;  %v334_v63 = vsel %vm262_vm0, %v328_v24, 0.0  ;;  %v335_v0 = vsel %vm262_vm0, %v330_v56, 0.0  ;;  %v339_v7 = vsel %vm262_vm0, %v329_v31, 0.0  ;;  %v326_v16 = vld [vmem:[#allocation3] sm:$0xff]  ;;  %v327_v24 = vld [vmem:[#allocation3 + $0x8] sm:$0xff] }
  0x5b   : > { %v308_v13 = vadd.f32 %v307_v51, %v306_v57  ;;  %v336_v14 = vadd.f32 %v335_v0, %v334_v63  ;;  %v337_v18 = vsel %vm262_vm0, %v332_v59, 0.0  ;;  %v340_v15 = vsel %vm262_vm0, %v331_v58, 0.0 }
  0x5c   : > { %v315_v19 = vadd.f32 %v314_v55, %v313_v62  ;;  %v341_v20 = vadd.f32 %v340_v15, %v339_v7  ;;  %v342_v21 = vsel %vm262_vm0, %v333_v60, 0.0  ;;  %v362_v22 = vsel %vm356_vm1, %v360_v10, %v361_v17 }
  0x5d   : > { %v316_v23 = vadd.f32 %v308_v13, %v283_v61  ;;  %v338_v25 = vadd.f32 %v337_v18, %v336_v14  ;;  %v363_v26 = vrot.slane %v993_v5, 7  ;;  %v364_v27 = vrot.slane %v995_v6, 7 }
  0x5e   : > { %v317_v28 = vadd.f32 %v315_v19, %v284_v9  ;;  %v343_v29 = vadd.f32 %v342_v21, %v341_v20  ;;  %v366_v30 = vrot.slane %v1002_v11, 7  ;;  %v367_v31 = vrot.slane %v1004_v12, 7 }
  0x5f   : > { %318 = vst.msk [vmem:[#allocation2] sm:$0xff] %vm262_vm0, %v316_v23  ;;  %v344_v32 = vadd.f32 %v338_v25, %v326_v16  ;;  %v365_v33 = vsel %vm356_vm1, %v363_v26, %v364_v27  ;;  %v377_v17 = vsub.f32 %v985_v1, %v357_v8  ;;  %v379_v37 = vsub.f32 %v989_v3, %v360_v10 }
  0x60   : > { %319 = vst.msk [vmem:[#allocation2 + $0x8] sm:$0xff] %vm262_vm0, %v317_v28  ;;  %v345_v35 = vadd.f32 %v343_v29, %v327_v24  ;;  %v368_v36 = vsel %vm356_vm1, %v366_v30, %v367_v31  ;;  %v380_v38 = vsub.f32 %v991_v4, %v362_v22  ;;  %v381_v39 = vsub.f32 %v993_v5, %v363_v26 }
  0x61   : > { %346 = vst.msk [vmem:[#allocation3] sm:$0xff] %vm262_vm0, %v344_v32  ;;  %v382_v40 = vsub.f32 %v995_v6, %v365_v33  ;;  %v383_v1 = vsub.f32 %v1002_v11, %v366_v30  ;;  %v384_v2 = vsub.f32 %v1004_v12, %v368_v36  ;;  %v385_v8 = vand.u32 2147483647, %v377_v17 }
  0x62   : > { %347 = vst.msk [vmem:[#allocation3 + $0x8] sm:$0xff] %vm262_vm0, %v345_v35  ;;  %v386_v41 = vand.u32 2147483647, %v378_v34  ;;  %v387_v42 = vand.u32 2147483647, %v379_v37  ;;  %vm412_vm3 = vcmask 1046528  }
  0x63   : > { %v388_v43 = vand.u32 2147483647, %v380_v38  ;;  %v389_v44 = vand.u32 2147483647, %v381_v39  ;;  %v390_v3 = vand.u32 2147483647, %v382_v40 }
  0x64   : > { %v391_v10 = vand.u32 2147483647, %v383_v1  ;;  %v392_v4 = vand.u32 2147483647, %v384_v2  ;;  %v394_v45 = vsel %vm393_vm2, %v385_v8, 0.0  ;;  %v395_v5 = vsel %vm393_vm2, %v387_v42, 0.0 }
  0x65   : > { %v396_v46 = vadd.f32 %v395_v5, %v394_v45  ;;  %v397_v6 = vsel %vm393_vm2, %v389_v44, 0.0  ;;  %v401_v11 = vsel %vm262_vm0, %v386_v41, 0.0  ;;  %v402_v12 = vsel %vm262_vm0, %v388_v43, 0.0 }
  0x66   : > { %v426_v47 = vld [vmem:[#allocation2] sm:$0xff]  ;;  %v399_v48 = vsel %vm393_vm2, %v391_v10, 0.0  ;;  %v403_v49 = vadd.f32 %v402_v12, %v401_v11  ;;  %v404_v50 = vsel %vm262_vm0, %v390_v3, 0.0  ;;  %v406_v54 = vsel %vm262_vm0, %v392_v4, 0.0 }
  0x67   : > { %v427_v51 = vld [vmem:[#allocation2 + $0x8] sm:$0xff]  ;;  %v428_v52 = vsel %vm262_vm0, %v426_v47, 0.0  ;;  %v398_v53 = vadd.f32 %v397_v6, %v396_v46  ;;  %vm421_vm4 = vcmask 129024  }
  0x68   : > { %v429_v55 = vsel %vm262_vm0, %v427_v51, 0.0  ;;  %v405_v56 = vadd.f32 %v404_v50, %v403_v49  ;;  %v408_v62 = vld [vmem:[#allocation3] sm:$0xff] }
  0x69   : > { %v430_v57 = vadd.f32 %v429_v55, %v428_v52  ;;  %v400_v58 = vadd.f32 %v399_v48, %v398_v53  ;;  %v409_v60 = vld [vmem:[#allocation3 + $0x8] sm:$0x7f] }
  0x6a   : > { %v407_v59 = vadd.f32 %v406_v54, %v405_v56 }
  0x6b   : > { %431 = vadd.xlane.f32.xlu0 %v430_v57  ;;  %v413_v61 = vrot.slane %v400_v58, 1 }
  0x6c   : > { %v414_v63 = vrot.slane %v407_v59, 1 }
  0x6e   : > { %v415_v0 = vsel %vm412_vm3, %v413_v61, %v414_v63  ;;  %v419_v7 = vadd.f32 %v414_v63, %v409_v60 }
  0x6f   : > { %v418_v9 = vadd.f32 %v415_v0, %v408_v62 }
  0x70   : > { %422 = vst.msk [vmem:[#allocation3 + $0x8] sm:$0x7f] %vm421_vm4, %v419_v7 }
  0x71   : > { %420 = vst.msk [vmem:[#allocation3] sm:$0xff] %vm262_vm0, %v418_v9 }
  0x77   : > { %v444_v13 = vld [vmem:[#allocation3 + $0x8] sm:$0xff] }
  0x78   : > { %v443_v14 = vld [vmem:[#allocation3] sm:$0xff]  ;;  %v446_v18 = vsel %vm262_vm0, %v444_v13, 0.0 }
  0x79   : > { %v445_v15 = vsel %vm262_vm0, %v443_v14, 0.0 }
  0x7a   : > { %v447_v19 = vadd.f32 %v446_v18, %v445_v15 }
  0x7c   : > { %448 = vadd.xlane.f32.xlu0 %v447_v19 }
  0xf8   : > { %v432_v16 = vpop.xlane.xlu0 %431 }
  0xf9   : > { %v433_v20 = vrot.slane %v432_v16, 4 }
  0xfb   : > { %v434_v21 = vadd.f32 %v433_v20, %v432_v16 }
  0xfd   : > { %v435_v22 = vrot.slane %v434_v21, 2 }
  0xff   : > { %v436_v23 = vadd.f32 %v435_v22, %v434_v21 }
 0x101   : > { %v437_v24 = vrot.slane %v436_v23, 1 }
 0x103   : > { %v438_v25 = vadd.f32 %v437_v24, %v436_v23 }
 0x105   : > { %610 = vpush %v438_v25 }
 0x109   : > { %v449_v26 = vpop.xlane.xlu0 %448 }
 0x10a   : > { %v450_v27 = vrot.slane %v449_v26, 4 }
 0x10c   : > { %v451_v28 = vadd.f32 %v450_v27, %v449_v26 }
 0x10e   : > { %v452_v29 = vrot.slane %v451_v28, 2 }
 0x110   : > { %v453_v30 = vadd.f32 %v452_v29, %v451_v28 }
 0x112   : > { %v454_v31 = vrot.slane %v453_v30, 1 }
 0x114   : > { %v455_v32 = vadd.f32 %v454_v31, %v453_v30 }
 0x116   : > { %612 = vpush %v455_v32 }
 0x136   : > { %s611_s11 = spop %610 }
 0x137   : > { %v440_v33 = vstv %s611_s11 }
 0x138   : > { %442 = vst [vmem:[%s253_s8] sm:$0xff] %v440_v33 }
 0x147   : > { %s613_s21 = spop %612 }
 0x148   : > { %v457_v17 = vstv %s613_s21 }
 0x149   : > { %459 = vst [vmem:[%s257_s26] sm:$0xff] %v457_v17 }
 0x14a PF: > { %s20_s17 = sadd.s32 1, %s791_s17   ;;  %s1124_s12 = smov %s775_s13 }
 0x14b   : > { %p17_p11 = scmp.ge.s32.totalorder %s20_s17, 4   ;;  %s1125_s13 = smov %s779_s14 }
 0x14c   : > { %s1126_s14 = smov %s867_s24  ;;  %s1127_s15 = smov %s787_s16 }
 0x14d   : > { %s1128_s16 = smov %s1130_s19  ;;  %19 = sbr.rel (!%p17_p11) target bundleno = 6 (0x6), region = 101 }
 0x154   :  { %493 = vsyncpa [#allocation5], 1 }
 0x155   :  { %495 = vsyncpa [#allocation5 + $0x1], 1 }
 0x156   :  { %496 = vsyncpa [#allocation7], 1 }
 0x157   :  { %498 = vsyncpa [#allocation7 + $0x1], 1 }

</bundles_post_ra>
